<compile_context>
chip_gen: v5e
topology: v5e:2x2
jax: 0.10.0
libtpu: 0.0.40
codegen_flags: <defaults>
</compile_context>

<pallas_src>
import functools

import jax
import jax.numpy as jnp
from jax.experimental import pallas as pl
from jax.experimental.pallas import tpu as pltpu


def _round_up(x, m):
    return -(-x // m) * m


# ---------------------------------------------------------------------------
# GRU gate math (PyTorch r,z,n ordering).  r/z sigmoids fused into one call.
# ---------------------------------------------------------------------------
def _gru_gates(gi, gh, h, H):
    rz = jax.nn.sigmoid(gi[:, :2 * H] + gh[:, :2 * H])
    r = rz[:, :H]
    zg = rz[:, H:2 * H]
    n = jnp.tanh(gi[:, 2 * H:3 * H] + r * gh[:, 2 * H:3 * H])
    return (1.0 - zg) * n + zg * h


# ---------------------------------------------------------------------------
# Pallas kernel: full forward pass for a block of TR rows.
# ---------------------------------------------------------------------------
def feudal_kernel(
    x_ref,                      # [TR, Hm+Hw+obs+1]  input slab: [hm | hw | obs | 1]
    w1_ref,                     # block-diag:  x -> [z | 1 | gh_m | gh_w]  (biases folded)
    w2_ref,                     # fused z-proj: [z|1] -> [gi_m | pad | gi_wz] (biases folded)
    wg_ref,                     # worker goal-part input weights [goal, 3Hw]
    wmf_ref, bmf_ref,           # manager fc
    wwf_ref, bwf_ref,           # worker fc (cols padded so out slab is 128-lane dense)
    out_ref,                    # [TR, out_pad]  = [g | hm_new | hw_new | logits(+pad)]
    *, feature, Hm, Hw, gim_pad,
):
    cdt = w1_ref.dtype          # MXU operand dtype (bf16 or f32)
    f32 = jnp.float32

    x = x_ref[...]
    hm = x[:, 0:Hm]
    hw = x[:, Hm:Hm + Hw]

    # ---- ONE block-diagonal matmul: perceptual + manager hh + worker hh (+ biases) ----
    p1 = jnp.dot(x.astype(cdt), w1_ref[...], preferred_element_type=f32)
    z_ext = jnp.maximum(p1[:, 0:feature + 1], 0.0)      # [TR, feature+1]; last col == 1
    o = feature + 1
    gh_m = p1[:, o:o + 3 * Hm]
    gh_w = p1[:, o + 3 * Hm:o + 3 * Hm + 3 * Hw]

    # ---- fused x-projection for both GRUs (shared LHS z, biases via ones col) ----
    p2 = jnp.dot(z_ext.astype(cdt), w2_ref[...], preferred_element_type=f32)
    gi_m = p2[:, 0:3 * Hm]                              # lane-aligned (prefix)
    gi_wz = p2[:, gim_pad:gim_pad + 3 * Hw]             # lane-aligned (starts at 128)

    # ---- Manager GRU cell ----
    hm_new = _gru_gates(gi_m, gh_m, hm, Hm)

    # ---- Manager fc + L2 normalize (F.normalize p=2 dim=-1 eps=1e-12) ----
    g_raw = (jnp.dot(hm_new.astype(cdt), wmf_ref[...], preferred_element_type=f32)
             + bmf_ref[...])
    sumsq = jnp.sum(g_raw * g_raw, axis=-1, keepdims=True)
    g = g_raw * jax.lax.rsqrt(jnp.maximum(sumsq, 1e-24))   # == 1/max(||g||, 1e-12)

    # ---- Worker GRU cell (input = concat(z, g); z part already in gi_wz) ----
    gi_w = gi_wz + jnp.dot(g.astype(cdt), wg_ref[...], preferred_element_type=f32)
    hw_new = _gru_gates(gi_w, gh_w, hw, Hw)

    # ---- Worker fc (output columns pre-padded -> lane-dense 128-wide store) ----
    logits_pad = (jnp.dot(hw_new.astype(cdt), wwf_ref[...], preferred_element_type=f32)
                  + bwf_ref[...])

    out_ref[...] = jnp.concatenate([g, hm_new, hw_new, logits_pad], axis=-1)


# ---------------------------------------------------------------------------
# One-time weight preparation (hoisted out of the per-call path).
# ---------------------------------------------------------------------------
def prepare_params(params, *, use_bf16=True):
    wdt = jnp.bfloat16 if use_bf16 else jnp.float32
    f32 = jnp.float32

    feature, obs_dim = params["wp"].shape
    Hm = params["wm_hh"].shape[1]
    Hw = params["ww_hh"].shape[1]
    goal = params["wmf"].shape[0]
    action = params["wwf"].shape[0]

    # --- W1: block-diag, input [hm | hw | obs | 1] -> output [z | 1 | gh_m | gh_w] ---
    Dx = Hm + Hw + obs_dim + 1
    C1 = feature + 1 + 3 * Hm + 3 * Hw
    r_hm, r_hw, r_ob, r_b = 0, Hm, Hm + Hw, Hm + Hw + obs_dim
    c_z, c_one, c_m, c_w = 0, feature, feature + 1, feature + 1 + 3 * Hm
    w1 = jnp.zeros((Dx, C1), f32)
    w1 = w1.at[r_ob:r_ob + obs_dim, c_z:c_z + feature].set(params["wp"].T)
    w1 = w1.at[r_b, c_z:c_z + feature].set(params["bp"])
    w1 = w1.at[r_b, c_one].set(1.0)                      # threads a const-1 col into z_ext
    w1 = w1.at[r_hm:r_hm + Hm, c_m:c_m + 3 * Hm].set(params["wm_hh"].T)
    w1 = w1.at[r_b, c_m:c_m + 3 * Hm].set(params["bm_hh"])
    w1 = w1.at[r_hw:r_hw + Hw, c_w:c_w + 3 * Hw].set(params["ww_hh"].T)
    w1 = w1.at[r_b, c_w:c_w + 3 * Hw].set(params["bw_hh"])
    w1 = w1.astype(wdt)

    # --- W2: [z | 1] -> [gi_m | pad_to_128 | gi_wz], biases bm_ih / bw_ih folded ---
    gim_pad = _round_up(3 * Hm, 128)
    C2 = gim_pad + 3 * Hw
    w2 = jnp.zeros((feature + 1, C2), f32)
    w2 = w2.at[:feature, 0:3 * Hm].set(params["wm_ih"].T)
    w2 = w2.at[feature, 0:3 * Hm].set(params["bm_ih"])
    w2 = w2.at[:feature, gim_pad:gim_pad + 3 * Hw].set(params["ww_ih"].T[:feature])
    w2 = w2.at[feature, gim_pad:gim_pad + 3 * Hw].set(params["bw_ih"])
    w2 = w2.astype(wdt)

    # --- worker goal-part input weights (its bias already folded into W2) ---
    wg = params["ww_ih"].T[feature:].astype(wdt)         # [goal, 3*Hw]

    # --- manager fc ---
    wmf = params["wmf"].T.astype(wdt)                    # [Hm, goal]
    bmf = params["bmf"].reshape(1, -1).astype(f32)

    # --- worker fc, zero-padded so [g|hm|hw|logits+pad] is a multiple of 128 lanes ---
    out_core = goal + Hm + Hw + action
    out_pad = _round_up(out_core, 128)
    logit_block = out_pad - (goal + Hm + Hw)
    wwf = jnp.zeros((Hw, logit_block), f32).at[:, :action].set(params["wwf"].T).astype(wdt)
    bwf = jnp.zeros((1, logit_block), f32).at[0, :action].set(params["bwf"])

    weights = (w1, w2, wg, wmf, bmf, wwf, bwf)
    meta = dict(obs_dim=obs_dim, feature=feature, Hm=Hm, Hw=Hw,
                goal=goal, action=action, gim_pad=gim_pad, out_pad=out_pad)
    return weights, meta


# ---------------------------------------------------------------------------
# Wrapper
# ---------------------------------------------------------------------------
def feudal_forward(obs, manager_hidden, worker_hidden, prepared, *, meta, row_tile=512):
    """obs: [B, A, obs_dim]; manager_hidden: [1, B*A, Hm]; worker_hidden: [1, B*A, Hw]."""
    w1, w2, wg, wmf, bmf, wwf, bwf = prepared
    obs_dim, feature = meta["obs_dim"], meta["feature"]
    Hm, Hw = meta["Hm"], meta["Hw"]
    goal, action = meta["goal"], meta["action"]
    gim_pad, out_pad = meta["gim_pad"], meta["out_pad"]

    B, A, _ = obs.shape
    N = B * A
    f32 = jnp.float32

    # Single lane-dense input slab: [hm | hw | obs | 1] (one DMA per row tile).
    x = jnp.concatenate([
        manager_hidden.reshape(N, Hm).astype(f32),
        worker_hidden.reshape(N, Hw).astype(f32),
        obs.reshape(N, obs_dim).astype(f32),
        jnp.ones((N, 1), f32),
    ], axis=1)
    Dx = x.shape[1]

    # Big row tiles amortize the ~0.35us per-grid-step cost; keep >= 2 grid steps
    # when N allows so the "parallel" axis spans both TensorCores on v7x.
    tr = min(row_tile, _round_up(N, 8))
    if N >= 16:
        tr = min(tr, max(8, _round_up(-(-N // 2), 8)))
    Np = _round_up(N, tr)
    if Np != N:
        x = jnp.pad(x, ((0, Np - N), (0, 0)))

    def row_spec(d):
        return pl.BlockSpec((tr, d), lambda i: (i, 0))

    def full_spec(arr):
        return pl.BlockSpec(arr.shape, lambda i: (0, 0))

    kernel = functools.partial(feudal_kernel, feature=feature, Hm=Hm, Hw=Hw,
                               gim_pad=gim_pad)
    weights = (w1, w2, wg, wmf, bmf, wwf, bwf)

    out = pl.pallas_call(
        kernel,
        out_shape=jax.ShapeDtypeStruct((Np, out_pad), f32),
        grid_spec=pltpu.PrefetchScalarGridSpec(
            num_scalar_prefetch=0,
            grid=(Np // tr,),
            in_specs=[row_spec(Dx)] + [full_spec(w) for w in weights],
            out_specs=row_spec(out_pad),
        ),
        compiler_params=pltpu.CompilerParams(
            dimension_semantics=("parallel",)),
    )(x, *weights)

    out = out[:N]
    g = out[:, 0:goal]
    hm_new = out[:, goal:goal + Hm]
    hw_new = out[:, goal + Hm:goal + Hm + Hw]
    logits = out[:, goal + Hm + Hw:goal + Hm + Hw + action]
    return (logits.reshape(B, A, action),
            g.reshape(B, A, goal),
            hm_new.reshape(1, N, Hm),
            hw_new.reshape(1, N, Hw))


# ---------------------------------------------------------------------------
# Pure-JAX f32 reference (mirrors PyTorch semantics) for a sanity check.
# ---------------------------------------------------------------------------
def _ref_forward(obs, hm, hw, p):
    B, A, _ = obs.shape
    N = B * A
    Hm = p["wm_hh"].shape[1]
    Hw = p["ww_hh"].shape[1]
    x = obs.reshape(N, -1)
    z = jnp.maximum(x @ p["wp"].T + p["bp"], 0.0)

    def gru(x, h, w_ih, w_hh, b_ih, b_hh, H):
        gi = x @ w_ih.T + b_ih
        gh = h @ w_hh.T + b_hh
        r = jax.nn.sigmoid(gi[:, :H] + gh[:, :H])
        zt = jax.nn.sigmoid(gi[:, H:2 * H] + gh[:, H:2 * H])
        n = jnp.tanh(gi[:, 2 * H:] + r * gh[:, 2 * H:])
        return (1 - zt) * n + zt * h

    hm2 = gru(z, hm.reshape(N, Hm), p["wm_ih"], p["wm_hh"], p["bm_ih"], p["bm_hh"], Hm)
    g_raw = hm2 @ p["wmf"].T + p["bmf"]
    g = g_raw / jnp.maximum(jnp.linalg.norm(g_raw, axis=-1, keepdims=True), 1e-12)
    xw = jnp.concatenate([z, g], axis=-1)
    hw2 = gru(xw, hw.reshape(N, Hw), p["ww_ih"], p["ww_hh"], p["bw_ih"], p["bw_hh"], Hw)
    logits = hw2 @ p["wwf"].T + p["bwf"]
    gd, ad = p["wmf"].shape[0], p["wwf"].shape[0]
    return (logits.reshape(B, A, ad), g.reshape(B, A, gd),
            hm2.reshape(1, N, Hm), hw2.reshape(1, N, Hw))


# ---------------------------------------------------------------------------
# Main
# ---------------------------------------------------------------------------
if __name__ == "__main__":
    # Small, module-consistent sizes.
    batch_size, n_agents = 2, 4
    obs_dim, feature_dim, goal_dim, action_dim = 16, 32, 16, 8
    manager_hidden_dim, worker_hidden_dim = 32, 32
    N = batch_size * n_agents

    key = jax.random.PRNGKey(0)
    ks = jax.random.split(key, 20)

    def u(k, shape, fan):
        s = 1.0 / (fan ** 0.5)
        return jax.random.uniform(k, shape, jnp.float32, -s, s)

    params = {
        # PerceptualModule Linear(obs_dim -> feature_dim)
        "wp": u(ks[0], (feature_dim, obs_dim), obs_dim),
        "bp": u(ks[1], (feature_dim,), obs_dim),
        # Manager GRU(feature_dim -> Hm)  (rows ordered r,z,n as in torch)
        "wm_ih": u(ks[2], (3 * manager_hidden_dim, feature_dim), manager_hidden_dim),
        "wm_hh": u(ks[3], (3 * manager_hidden_dim, manager_hidden_dim), manager_hidden_dim),
        "bm_ih": u(ks[4], (3 * manager_hidden_dim,), manager_hidden_dim),
        "bm_hh": u(ks[5], (3 * manager_hidden_dim,), manager_hidden_dim),
        # Manager fc(Hm -> goal_dim)
        "wmf": u(ks[6], (goal_dim, manager_hidden_dim), manager_hidden_dim),
        "bmf": u(ks[7], (goal_dim,), manager_hidden_dim),
        # Worker GRU(feature_dim + goal_dim -> Hw)
        "ww_ih": u(ks[8], (3 * worker_hidden_dim, feature_dim + goal_dim), worker_hidden_dim),
        "ww_hh": u(ks[9], (3 * worker_hidden_dim, worker_hidden_dim), worker_hidden_dim),
        "bw_ih": u(ks[10], (3 * worker_hidden_dim,), worker_hidden_dim),
        "bw_hh": u(ks[11], (3 * worker_hidden_dim,), worker_hidden_dim),
        # Worker fc(Hw -> action_dim)
        "wwf": u(ks[12], (action_dim, worker_hidden_dim), worker_hidden_dim),
        "bwf": u(ks[13], (action_dim,), worker_hidden_dim),
    }

    obs = jax.random.normal(ks[14], (batch_size, n_agents, obs_dim), jnp.float32)
    manager_hidden = jax.random.normal(ks[15], (1, N, manager_hidden_dim), jnp.float32)
    worker_hidden = jax.random.normal(ks[16], (1, N, worker_hidden_dim), jnp.float32)

    # Weight prep (fusion / block-diag build / bias folding / bf16 cast) done once.
    use_bf16 = True
    prepared, meta = prepare_params(params, use_bf16=use_bf16)
    prepared = jax.tree_util.tree_map(jax.device_put, prepared)

    fwd = jax.jit(functools.partial(feudal_forward, meta=meta, row_tile=512))
    outs = fwd(obs, manager_hidden, worker_hidden, prepared)
    outs = jax.block_until_ready(outs)

    ref = _ref_forward(obs, manager_hidden, worker_hidden, params)
    tol = 2e-2 if use_bf16 else 1e-3   # bf16 MXU operands, f32 accumulation
    for a, b in zip(outs, ref):
        assert a.shape == b.shape
        assert jnp.max(jnp.abs(a - b)) < tol, jnp.max(jnp.abs(a - b))

    print("KERNEL_OK")
</pallas_src>

<mosaic_0001>
module attributes {stable_mosaic.version = 11 : i64} {
  func.func @feudal_kernel(%arg0: i32, %arg1: memref<8x81xf32, #tpu.memory_space<vmem>>, %arg2: memref<81x225xbf16, #tpu.memory_space<vmem>>, %arg3: memref<33x224xbf16, #tpu.memory_space<vmem>>, %arg4: memref<16x96xbf16, #tpu.memory_space<vmem>>, %arg5: memref<32x16xbf16, #tpu.memory_space<vmem>>, %arg6: memref<1x16xf32, #tpu.memory_space<vmem>>, %arg7: memref<32x48xbf16, #tpu.memory_space<vmem>>, %arg8: memref<1x48xf32, #tpu.memory_space<vmem>>, %arg9: memref<8x128xf32, #tpu.memory_space<vmem>>) attributes {dimension_semantics = [#tpu.dimension_semantics<parallel>], iteration_bounds = array<i64: 1>, scalar_prefetch = 0 : i64, scratch_operands = 0 : i64, tpu.core_type = #tpu.core_type<tc>, window_params = [{transform_indices = @transform_0, window_bounds = array<i64: 8, 81>}, {pipeline_mode = #tpu.pipeline_mode<synchronous>, transform_indices = @transform_1, window_bounds = array<i64: 81, 225>}, {pipeline_mode = #tpu.pipeline_mode<synchronous>, transform_indices = @transform_2, window_bounds = array<i64: 33, 224>}, {pipeline_mode = #tpu.pipeline_mode<synchronous>, transform_indices = @transform_3, window_bounds = array<i64: 16, 96>}, {pipeline_mode = #tpu.pipeline_mode<synchronous>, transform_indices = @transform_4, window_bounds = array<i64: 32, 16>}, {pipeline_mode = #tpu.pipeline_mode<synchronous>, transform_indices = @transform_5, window_bounds = array<i64: 1, 16>}, {pipeline_mode = #tpu.pipeline_mode<synchronous>, transform_indices = @transform_6, window_bounds = array<i64: 32, 48>}, {pipeline_mode = #tpu.pipeline_mode<synchronous>, transform_indices = @transform_7, window_bounds = array<i64: 1, 48>}, {transform_indices = @transform_8, window_bounds = array<i64: 8, 128>}]} {
    %c0 = arith.constant 0 : index
    %c0_0 = arith.constant 0 : index
    %0 = vector.load %arg1[%c0, %c0_0] : memref<8x81xf32, #tpu.memory_space<vmem>>, vector<8x81xf32>
    %1 = vector.extract_strided_slice %0 {offsets = [0, 0], sizes = [8, 32], strides = [1, 1]} : vector<8x81xf32> to vector<8x32xf32>
    %2 = vector.extract_strided_slice %0 {offsets = [0, 32], sizes = [8, 32], strides = [1, 1]} : vector<8x81xf32> to vector<8x32xf32>
    %3 = arith.truncf %0 : vector<8x81xf32> to vector<8x81xbf16>
    %c0_1 = arith.constant 0 : index
    %c0_2 = arith.constant 0 : index
    %4 = vector.load %arg2[%c0_1, %c0_2] : memref<81x225xbf16, #tpu.memory_space<vmem>>, vector<81x225xbf16>
    %cst = arith.constant dense<0.000000e+00> : vector<8x225xf32>
    %5 = tpu.matmul %3, %4, %cst {dimension_numbers = #tpu.dot_dimension_numbers<[1], [0], [0], [1], [0, 0, 1, 1], [], []>} : vector<8x81xbf16>, vector<81x225xbf16>, vector<8x225xf32> -> vector<8x225xf32>
    %6 = vector.extract_strided_slice %5 {offsets = [0, 0], sizes = [8, 33], strides = [1, 1]} : vector<8x225xf32> to vector<8x33xf32>
    %cst_3 = arith.constant 0.000000e+00 : f32
    %7 = vector.broadcast %cst_3 : f32 to vector<8x33xf32>
    %8 = arith.maximumf %6, %7 : vector<8x33xf32>
    %9 = vector.extract_strided_slice %5 {offsets = [0, 33], sizes = [8, 96], strides = [1, 1]} : vector<8x225xf32> to vector<8x96xf32>
    %10 = vector.extract_strided_slice %5 {offsets = [0, 129], sizes = [8, 96], strides = [1, 1]} : vector<8x225xf32> to vector<8x96xf32>
    %11 = arith.truncf %8 : vector<8x33xf32> to vector<8x33xbf16>
    %c0_4 = arith.constant 0 : index
    %c0_5 = arith.constant 0 : index
    %12 = vector.load %arg3[%c0_4, %c0_5] : memref<33x224xbf16, #tpu.memory_space<vmem>>, vector<33x224xbf16>
    %cst_6 = arith.constant dense<0.000000e+00> : vector<8x224xf32>
    %13 = tpu.matmul %11, %12, %cst_6 {dimension_numbers = #tpu.dot_dimension_numbers<[1], [0], [0], [1], [0, 0, 1, 1], [], []>} : vector<8x33xbf16>, vector<33x224xbf16>, vector<8x224xf32> -> vector<8x224xf32>
    %14 = vector.extract_strided_slice %13 {offsets = [0, 0], sizes = [8, 96], strides = [1, 1]} : vector<8x224xf32> to vector<8x96xf32>
    %15 = vector.extract_strided_slice %13 {offsets = [0, 128], sizes = [8, 96], strides = [1, 1]} : vector<8x224xf32> to vector<8x96xf32>
    %16 = vector.extract_strided_slice %14 {offsets = [0, 0], sizes = [8, 64], strides = [1, 1]} : vector<8x96xf32> to vector<8x64xf32>
    %17 = vector.extract_strided_slice %9 {offsets = [0, 0], sizes = [8, 64], strides = [1, 1]} : vector<8x96xf32> to vector<8x64xf32>
    %18 = arith.addf %16, %17 : vector<8x64xf32>
    %19 = arith.negf %18 : vector<8x64xf32>
    %20 = math.exp %19 : vector<8x64xf32>
    %cst_7 = arith.constant 1.000000e+00 : f32
    %21 = vector.broadcast %cst_7 : f32 to vector<8x64xf32>
    %22 = arith.addf %21, %20 : vector<8x64xf32>
    %23 = arith.divf %21, %22 : vector<8x64xf32>
    %24 = vector.extract_strided_slice %23 {offsets = [0, 0], sizes = [8, 32], strides = [1, 1]} : vector<8x64xf32> to vector<8x32xf32>
    %25 = vector.extract_strided_slice %23 {offsets = [0, 32], sizes = [8, 32], strides = [1, 1]} : vector<8x64xf32> to vector<8x32xf32>
    %26 = vector.extract_strided_slice %14 {offsets = [0, 64], sizes = [8, 32], strides = [1, 1]} : vector<8x96xf32> to vector<8x32xf32>
    %27 = vector.extract_strided_slice %9 {offsets = [0, 64], sizes = [8, 32], strides = [1, 1]} : vector<8x96xf32> to vector<8x32xf32>
    %28 = arith.mulf %24, %27 : vector<8x32xf32>
    %29 = arith.addf %26, %28 : vector<8x32xf32>
    %30 = math.tanh %29 : vector<8x32xf32>
    %cst_8 = arith.constant 1.000000e+00 : f32
    %31 = vector.broadcast %cst_8 : f32 to vector<8x32xf32>
    %32 = arith.subf %31, %25 : vector<8x32xf32>
    %33 = arith.mulf %32, %30 : vector<8x32xf32>
    %34 = arith.mulf %25, %1 : vector<8x32xf32>
    %35 = arith.addf %33, %34 : vector<8x32xf32>
    %36 = arith.truncf %35 : vector<8x32xf32> to vector<8x32xbf16>
    %c0_9 = arith.constant 0 : index
    %c0_10 = arith.constant 0 : index
    %37 = vector.load %arg5[%c0_9, %c0_10] : memref<32x16xbf16, #tpu.memory_space<vmem>>, vector<32x16xbf16>
    %cst_11 = arith.constant dense<0.000000e+00> : vector<8x16xf32>
    %38 = tpu.matmul %36, %37, %cst_11 {dimension_numbers = #tpu.dot_dimension_numbers<[1], [0], [0], [1], [0, 0, 1, 1], [], []>} : vector<8x32xbf16>, vector<32x16xbf16>, vector<8x16xf32> -> vector<8x16xf32>
    %c0_12 = arith.constant 0 : index
    %c0_13 = arith.constant 0 : index
    %39 = vector.load %arg6[%c0_12, %c0_13] : memref<1x16xf32, #tpu.memory_space<vmem>>, vector<1x16xf32>
    %40 = vector.broadcast %39 : vector<1x16xf32> to vector<8x16xf32>
    %41 = arith.addf %38, %40 : vector<8x16xf32>
    %42 = arith.mulf %41, %41 : vector<8x16xf32>
    %cst_14 = arith.constant dense<0.000000e+00> : vector<8xf32>
    %43 = vector.multi_reduction <add>, %42, %cst_14 [1] : vector<8x16xf32> to vector<8xf32>
    %44 = vector.shape_cast %43 : vector<8xf32> to vector<8x1xf32>
    %cst_15 = arith.constant 1.000000e-24 : f32
    %45 = vector.broadcast %cst_15 : f32 to vector<8x1xf32>
    %46 = arith.maximumf %44, %45 : vector<8x1xf32>
    %47 = math.rsqrt %46 : vector<8x1xf32>
    %48 = vector.broadcast %47 : vector<8x1xf32> to vector<8x16xf32>
    %49 = arith.mulf %41, %48 : vector<8x16xf32>
    %50 = arith.truncf %49 : vector<8x16xf32> to vector<8x16xbf16>
    %c0_16 = arith.constant 0 : index
    %c0_17 = arith.constant 0 : index
    %51 = vector.load %arg4[%c0_16, %c0_17] : memref<16x96xbf16, #tpu.memory_space<vmem>>, vector<16x96xbf16>
    %cst_18 = arith.constant dense<0.000000e+00> : vector<8x96xf32>
    %52 = tpu.matmul %50, %51, %cst_18 {dimension_numbers = #tpu.dot_dimension_numbers<[1], [0], [0], [1], [0, 0, 1, 1], [], []>} : vector<8x16xbf16>, vector<16x96xbf16>, vector<8x96xf32> -> vector<8x96xf32>
    %53 = arith.addf %15, %52 : vector<8x96xf32>
    %54 = vector.extract_strided_slice %53 {offsets = [0, 0], sizes = [8, 64], strides = [1, 1]} : vector<8x96xf32> to vector<8x64xf32>
    %55 = vector.extract_strided_slice %10 {offsets = [0, 0], sizes = [8, 64], strides = [1, 1]} : vector<8x96xf32> to vector<8x64xf32>
    %56 = arith.addf %54, %55 : vector<8x64xf32>
    %57 = arith.negf %56 : vector<8x64xf32>
    %58 = math.exp %57 : vector<8x64xf32>
    %cst_19 = arith.constant 1.000000e+00 : f32
    %59 = vector.broadcast %cst_19 : f32 to vector<8x64xf32>
    %60 = arith.addf %59, %58 : vector<8x64xf32>
    %61 = arith.divf %59, %60 : vector<8x64xf32>
    %62 = vector.extract_strided_slice %61 {offsets = [0, 0], sizes = [8, 32], strides = [1, 1]} : vector<8x64xf32> to vector<8x32xf32>
    %63 = vector.extract_strided_slice %61 {offsets = [0, 32], sizes = [8, 32], strides = [1, 1]} : vector<8x64xf32> to vector<8x32xf32>
    %64 = vector.extract_strided_slice %53 {offsets = [0, 64], sizes = [8, 32], strides = [1, 1]} : vector<8x96xf32> to vector<8x32xf32>
    %65 = vector.extract_strided_slice %10 {offsets = [0, 64], sizes = [8, 32], strides = [1, 1]} : vector<8x96xf32> to vector<8x32xf32>
    %66 = arith.mulf %62, %65 : vector<8x32xf32>
    %67 = arith.addf %64, %66 : vector<8x32xf32>
    %68 = math.tanh %67 : vector<8x32xf32>
    %cst_20 = arith.constant 1.000000e+00 : f32
    %69 = vector.broadcast %cst_20 : f32 to vector<8x32xf32>
    %70 = arith.subf %69, %63 : vector<8x32xf32>
    %71 = arith.mulf %70, %68 : vector<8x32xf32>
    %72 = arith.mulf %63, %2 : vector<8x32xf32>
    %73 = arith.addf %71, %72 : vector<8x32xf32>
    %74 = arith.truncf %73 : vector<8x32xf32> to vector<8x32xbf16>
    %c0_21 = arith.constant 0 : index
    %c0_22 = arith.constant 0 : index
    %75 = vector.load %arg7[%c0_21, %c0_22] : memref<32x48xbf16, #tpu.memory_space<vmem>>, vector<32x48xbf16>
    %cst_23 = arith.constant dense<0.000000e+00> : vector<8x48xf32>
    %76 = tpu.matmul %74, %75, %cst_23 {dimension_numbers = #tpu.dot_dimension_numbers<[1], [0], [0], [1], [0, 0, 1, 1], [], []>} : vector<8x32xbf16>, vector<32x48xbf16>, vector<8x48xf32> -> vector<8x48xf32>
    %c0_24 = arith.constant 0 : index
    %c0_25 = arith.constant 0 : index
    %77 = vector.load %arg8[%c0_24, %c0_25] : memref<1x48xf32, #tpu.memory_space<vmem>>, vector<1x48xf32>
    %78 = vector.broadcast %77 : vector<1x48xf32> to vector<8x48xf32>
    %79 = arith.addf %76, %78 : vector<8x48xf32>
    %80 = tpu.concatenate %49, %35, %73, %79 in 1 : vector<8x16xf32>, vector<8x32xf32>, vector<8x32xf32>, vector<8x48xf32> -> vector<8x128xf32>
    %c0_26 = arith.constant 0 : index
    %c0_27 = arith.constant 0 : index
    %81 = vector.load %arg9[%c0_26, %c0_27] : memref<8x128xf32, #tpu.memory_space<vmem>>, vector<8x128xf32>
    tpu.vector_store %arg9[%c0_26, %c0_27], %80 {strides = array<i32>} : memref<8x128xf32, #tpu.memory_space<vmem>>, vector<8x128xf32>,
    return
  }
  func.func @transform_0(%arg0: i32) -> (i32, i32) {
    %c0_i32 = arith.constant 0 : i32
    %c0_i32_0 = arith.constant 0 : i32
    return %arg0, %c0_i32 : i32, i32
  }
  func.func @transform_1(%arg0: i32) -> (i32, i32) {
    %c0_i32 = arith.constant 0 : i32
    %c0_i32_0 = arith.constant 0 : i32
    %c0_i32_1 = arith.constant 0 : i32
    return %c0_i32, %c0_i32_0 : i32, i32
  }
  func.func @transform_2(%arg0: i32) -> (i32, i32) {
    %c0_i32 = arith.constant 0 : i32
    %c0_i32_0 = arith.constant 0 : i32
    %c0_i32_1 = arith.constant 0 : i32
    return %c0_i32, %c0_i32_0 : i32, i32
  }
  func.func @transform_3(%arg0: i32) -> (i32, i32) {
    %c0_i32 = arith.constant 0 : i32
    %c0_i32_0 = arith.constant 0 : i32
    %c0_i32_1 = arith.constant 0 : i32
    return %c0_i32, %c0_i32_0 : i32, i32
  }
  func.func @transform_4(%arg0: i32) -> (i32, i32) {
    %c0_i32 = arith.constant 0 : i32
    %c0_i32_0 = arith.constant 0 : i32
    %c0_i32_1 = arith.constant 0 : i32
    return %c0_i32, %c0_i32_0 : i32, i32
  }
  func.func @transform_5(%arg0: i32) -> (i32, i32) {
    %c0_i32 = arith.constant 0 : i32
    %c0_i32_0 = arith.constant 0 : i32
    %c0_i32_1 = arith.constant 0 : i32
    return %c0_i32, %c0_i32_0 : i32, i32
  }
  func.func @transform_6(%arg0: i32) -> (i32, i32) {
    %c0_i32 = arith.constant 0 : i32
    %c0_i32_0 = arith.constant 0 : i32
    %c0_i32_1 = arith.constant 0 : i32
    return %c0_i32, %c0_i32_0 : i32, i32
  }
  func.func @transform_7(%arg0: i32) -> (i32, i32) {
    %c0_i32 = arith.constant 0 : i32
    %c0_i32_0 = arith.constant 0 : i32
    %c0_i32_1 = arith.constant 0 : i32
    return %c0_i32, %c0_i32_0 : i32, i32
  }
  func.func @transform_8(%arg0: i32) -> (i32, i32) {
    %c0_i32 = arith.constant 0 : i32
    %c0_i32_0 = arith.constant 0 : i32
    return %arg0, %c0_i32 : i32, i32
  }
}

</mosaic_0001>

<bundles_post_ra>
// kernel: feudal_forward.1
= control target key start
LH: loop header
LB: loop body
LE: loop exit
PB: predicated region body
PF: predicated region fallthrough
CT: control target
= control target key end

     0   :  { %13 = vsyncpa [#allocation3], 0  ;;  %s817_s0 = inlined_call_operand.vmem [shape: f32[8,81], index: 0, kind: input, shape index: {}]   ;;  %s818_s1 = inlined_call_operand.hbm [shape: bf16[81,225], index: 1, kind: input, shape index: {}]   ;;  %s819_s2 = inlined_call_operand.vmem [shape: bf16[33,224], index: 2, kind: input, shape index: {}]   ;;  %s820_s3 = inlined_call_operand.vmem [shape: bf16[16,96], index: 3, kind: input, shape index: {}]   ;;  %s821_s4 = inlined_call_operand.vmem [shape: bf16[32,16], index: 4, kind: input, shape index: {}]   ;;  %s822_s5 = inlined_call_operand.vmem [shape: f32[1,16], index: 5, kind: input, shape index: {}]   ;;  %s823_s6 = inlined_call_operand.hbm [shape: bf16[32,48], index: 6, kind: input, shape index: {}]   ;;  %s824_s7 = inlined_call_operand.vmem [shape: f32[1,48], index: 7, kind: input, shape index: {}]   ;;  %s825_s8 = inlined_call_operand.vmem [shape: f32[8,128], index: 8, kind: output, shape index: {}]  }
   0x1   :  { %s21_s29 = sshll.u32 %s818_s1, 4  ;;  %s22_s29 = int_to_ptr.hbm [resolvable:$true] %s21_s29 }
   0x2   :  { %14 = vsyncpa [#allocation5], 0  ;;  %s665_s30 = smov [#allocation2]   ;;  %s42_s12 = sshll.u32 %s823_s6, 4  ;;  %s43_s12 = int_to_ptr.hbm [resolvable:$true] %s42_s12 }
   0x3   :  { %s23_s9 = sshll.u32 %s665_s30, 4  ;;  %s666_s13 = smov 128   ;;  %s24_s9 = int_to_ptr.vmem [resolvable:$true] %s23_s9 }
   0x4   :  { %s667_s14 = smov 8   ;;  %s668_s15 = smov [#allocation4]  }
   0x5   :  { %29 = dma.hbm_to_vmem [thread:$0]  %s22_s29, 1408, %s24_s9, [#allocation3], %s666_s13, %s666_s13, %s667_s14  }
   0x6   :  { %s44_s16 = sshll.u32 %s668_s15, 4  ;;  %s669_s17 = smov 64   ;;  %s45_s16 = int_to_ptr.vmem [resolvable:$true] %s44_s16 }
   0x7   :  { %s670_s18 = smov 4  }
   0x8   :  { %50 = dma.hbm_to_vmem [thread:$0]  %s43_s12, 256, %s45_s16, [#allocation5], %s669_s17, %s669_s17, %s670_s18  }
   0x9   :  { %661 = dma.done.wait [#allocation3], 1408  }
   0xa   :  { %662 = vsyncadd [#allocation3], 4294965888 }
   0xb   :  { %663 = dma.done.wait [#allocation5], 256  }
   0xc   :  { %664 = vsyncadd [#allocation5], 4294967040  ;;  %vm134_vm0 = vcmask 1040384   ;;  %v74_v0 = vld [vmem:[#allocation2 + $0x50] sm:$0x11]  ;;  %v671_v3 = vmov 0  }
   0xd   :  { %v106_v1 = vunpack.c.l.b16 %v74_v0  ;;  %v107_v2 = vunpack.c.h.b16 %v74_v0  ;;  %v136_v4 = vsel %vm134_vm0, 65535, %v671_v3  ;;  %v511_v6 = vld [vmem:[#allocation2 + $0x40] sm:$0xf]  ;;  %v571_v8 = vld [vmem:[#allocation2 + $0x44] sm:$0xf0]  ;;  %vm130_vm1 = vcmask 662528  }
   0xe   :  { %v570_v9 = vld [vmem:[#allocation2 + $0x44] sm:$0xf]  ;;  %v513_v10 = vld [vmem:[#allocation2 + $0x48] sm:$0xf0]  ;;  %v512_v13 = vor.u32 %v571_v8, %v511_v6  ;;  %v503_v14 = vld [vmem:[#allocation2 + $0x30] sm:$0xf] }
   0xf   :  { %v118_v5 = vpack.c.b16 %v106_v1, %v106_v1  ;;  %v119_v7 = vpack.c.b16 %v107_v2, %v107_v2  ;;  %v516_v15 = vor.u32 %v570_v9, %v513_v10  ;;  %v175_v16 = vld [vmem:[%s819_s2 + $0x20] sm:$0x11]  ;;  %v569_v17 = vld [vmem:[#allocation2 + $0x34] sm:$0xf0]  ;;  %v568_v18 = vld [vmem:[#allocation2 + $0x34] sm:$0xf] }
  0x10   :  { %v505_v19 = vld [vmem:[#allocation2 + $0x38] sm:$0xf0]  ;;  %v189_v20 = vunpack.c.l.b16 %v175_v16  ;;  %v190_v21 = vunpack.c.h.b16 %v175_v16  ;;  %v495_v22 = vld [vmem:[#allocation2 + $0x20] sm:$0xf]  ;;  %v529_v25 = vld [vmem:[%s819_s2 + $0x10] sm:$0xf]  ;;  %v504_v26 = vor.u32 %v569_v17, %v503_v14 }
  0x11   :  { %v138_v11 = vand.u32 %v136_v4, %v118_v5  ;;  %v141_v12 = vand.u32 %v136_v4, %v119_v7  ;;  %v508_v27 = vor.u32 %v568_v18, %v505_v19  ;;  %v575_v28 = vld [vmem:[%s819_s2 + $0x14] sm:$0xf0]  ;;  %v574_v29 = vld [vmem:[%s819_s2 + $0x14] sm:$0xf]  ;;  %v531_v30 = vld [vmem:[%s819_s2 + $0x18] sm:$0xf0] }
  0x12   :  { %v195_v23 = vpack.c.b16 %v189_v20, %v189_v20  ;;  %v196_v24 = vpack.c.b16 %v190_v21, %v190_v21  ;;  %v567_v31 = vld [vmem:[#allocation2 + $0x24] sm:$0xf0]  ;;  %v566_v32 = vld [vmem:[#allocation2 + $0x24] sm:$0xf]  ;;  %v497_v33 = vld [vmem:[#allocation2 + $0x28] sm:$0xf0]  ;;  %v530_v36 = vor.u32 %v575_v28, %v529_v25  ;;  %v534_v37 = vor.u32 %v574_v29, %v531_v30 }
  0x13   :  { %145 = vmatpush.bf16.msra.mxu0 %v138_v11  ;;  %158 = vmatpush.bf16.msra.mxu1 %v141_v12  ;;  %v496_v38 = vor.u32 %v567_v31, %v495_v22  ;;  %v487_v39 = vld [vmem:[#allocation2 + $0x10] sm:$0xf]  ;;  %v500_v40 = vor.u32 %v566_v32, %v497_v33  ;;  %v565_v41 = vld [vmem:[#allocation2 + $0x14] sm:$0xf0]  ;;  %v564_v42 = vld [vmem:[#allocation2 + $0x14] sm:$0xf] }
  0x14   :  { %v206_v34 = vand.u32 %v195_v23, %v136_v4  ;;  %v209_v35 = vand.u32 %v196_v24, %v136_v4  ;;  %v489_v43 = vld [vmem:[#allocation2 + $0x18] sm:$0xf0]  ;;  %v488_v44 = vor.u32 %v565_v41, %v487_v39  ;;  %v479_v45 = vld [vmem:[#allocation2] sm:$0xf]  ;;  %v563_v47 = vld [vmem:[#allocation2 + $0x4] sm:$0xf0] }
  0x15   :  { %v492_v46 = vor.u32 %v564_v42, %v489_v43  ;;  %v562_v48 = vld [vmem:[#allocation2 + $0x4] sm:$0xf]  ;;  %v481_v49 = vld [vmem:[#allocation2 + $0x8] sm:$0xf0]  ;;  %v480_v50 = vor.u32 %v563_v47, %v479_v45  ;;  %v521_v54 = vld [vmem:[%s819_s2] sm:$0xf] }
  0x16   :  { %216 = vmatpush.bf16.msra.mxu2 %v206_v34  ;;  %229 = vmatpush.bf16.msra.mxu3 %v209_v35  ;;  %v752_v51 = vld [vmem:[%s817_s0] sm:$0xff]  ;;  %v484_v52 = vor.u32 %v562_v48, %v481_v49  ;;  %v573_v55 = vld [vmem:[%s819_s2 + $0x4] sm:$0xf0]  ;;  %v523_v58 = vld [vmem:[%s819_s2 + $0x8] sm:$0xf0]  ;;  %s672_s14 = smov 95  }
  0x17   :  { %146 = vmatpush.bf16.msra.mxu0 %v512_v13  ;;  %159 = vmatpush.bf16.msra.mxu1 %v516_v15  ;;  %v63_v53 = vpack.c.bf16 %v752_v51, %v752_v51  ;;  %v572_v56 = vld [vmem:[%s819_s2 + $0x4] sm:$0xf]  ;;  %v522_v57 = vor.u32 %v573_v55, %v521_v54  ;;  %s673_s15 = smov 31   ;;  %vm201_vm2 = vcmask 269312   ;;  %vm266_vm4 = vcmask 252928   ;;  %s674_s2 = smov 96  }
  0x18   :  { %v526_v59 = vor.u32 %v572_v56, %v523_v58  ;;  %s675_s16 = smov 32   ;;  %s676_s18 = smov 127   ;;  %v577_v28 = vld [vmem:[%s821_s4 + $0x8] sm:$0xff]  ;;  %v576_v29 = vld [vmem:[%s821_s4] sm:$0xff]  ;;  %vm312_vm8 = vcmask 261120   ;;  %vm330_vm9 = vcmask 130048  }
  0x19   :  { %s677_s21 = smov 63   ;;  %s680_s26 = smov 80  }
  0x1a   :  { %217 = vmatpush.bf16.msra.mxu2 %v530_v36  ;;  %230 = vmatpush.bf16.msra.mxu3 %v534_v37 }
  0x1b   :  { %147 = vmatpush.bf16.msra.mxu0 %v504_v26  ;;  %160 = vmatpush.bf16.msra.mxu1 %v508_v27 }
  0x1e   :  { %218 = vmatpush.bf16.msra.mxu2 %v522_v57  ;;  %231 = vmatpush.bf16.msra.mxu3 %v526_v59 }
  0x1f   :  { %148 = vmatpush.bf16.msra.mxu0 %v496_v38  ;;  %161 = vmatpush.bf16.msra.mxu1 %v500_v40  ;;  %v597_v38 = vld [vmem:[%s822_s5] ss:$0 sm:$0xff]  ;;  %s679_s5 = smov 16  }
  0x22   :  { %322 = vmatpush.bf16.msrb.mxu2 %v577_v28 }
  0x23   :  { %149 = vmatpush.bf16.msra.mxu0 %v488_v44  ;;  %162 = vmatpush.bf16.msra.mxu1 %v492_v46  ;;  %v578_v44 = vld [vmem:[%s820_s3] sm:$0xff]  ;;  %s678_s3 = smov 112  }
  0x24   :  { %365 = vmatpush.bf16.msrb.mxu3 %v578_v44 }
  0x26   :  { %323 = vmatpush.bf16.msrb.mxu2 %v576_v29 }
  0x27   :  { %150 = vmatpush.bf16.msra.mxu0 %v480_v50  ;;  %163 = vmatpush.bf16.msra.mxu1 %v484_v52 }
  0x2a   :  { %517 = vmatmul.msk.bf16.vlgmr.msra.gmra.mxu0 %vm130_vm1, %v63_v53  ;;  %518 = vmatmul.msk.bf16.vlgmr.msra.gmra.mxu1 %vm130_vm1, %v63_v53  ;;  %vm466_vm1 = vcmask 392192  }
  0xa7   :  { %v152_v60 = vpop.f32.mrf.mxu0  ;;  %v768_v61 = vpop.f32.mrf.mxu1 }
  0xa8   :  { %v169_v62 = vmax.f32 %v152_v60, 0.0  ;;  %238 = vrot.lane.b32.xlu0 %v152_v60, %s672_s14  ;;  %264 = vrot.lane.b32.xlu1 %v768_v61, %s673_s15 }
  0xaa   :  { %v170_v63 = vpack.c.bf16 %v169_v62, %v169_v62 }
  0xac   :  { %535 = vmatmul.msk.bf16.vlgmr.msra.gmra.mxu2 %vm201_vm2, %v170_v63  ;;  %536 = vmatmul.msk.bf16.vlgmr.msra.gmra.mxu3 %vm201_vm2, %v170_v63  ;;  %vm468_vm2 = vcmask 654336  }
  0xaf   :  { %v154_v0 = vpop.f32.mrf.mxu0  ;;  %v167_v1 = vpop.f32.mrf.mxu1 }
  0xb0   :  { %262 = vrot.lane.b32.xlu0 %v152_v60, %s673_s15 }
 0x11a   :  { %v239_v2 = vpop.permute.xlu0 %238  ;;  %v265_v17 = vpop.permute.xlu1 %264 }
 0x122   :  { %v263_v18 = vpop.permute.xlu0 %262 }
 0x123   :  { %v267_v22 = vsel %vm266_vm4, %v263_v18, %v265_v17  ;;  %v579_v17 = vld [vmem:[#allocation4] sm:$0xff] }
 0x12f   :  { %v220_v3 = vpop.f32.mrf.mxu2  ;;  %v771_v4 = vpop.f32.mrf.mxu3 }
 0x130   :  { %v241_v5 = vadd.f32 %v239_v2, %v220_v3 }
 0x132   :  { %v537_v6 = vmul.f32 -1.442695, %v241_v5 }
 0x134   :  { %599 = vpow2.f32 %v537_v6 }
 0x137   :  { %v222_v7 = vpop.f32.mrf.mxu2  ;;  %v235_v8 = vpop.f32.mrf.mxu3 }
 0x13a   :  { %v600_v9 = vpop.eup %599 }
 0x13b   :  { %v245_v10 = vadd.f32 1.0, %v600_v9 }
 0x13d   :  { %601 = vrcp.f32 %v245_v10  ;;  %v257_v14 = vand.u32 2147483648, %v245_v10  ;;  %v255_v16 = vand.u32 2147483647, %v245_v10  ;;  %vm251_vm5 = vweird.f32 %v245_v10 }
 0x13f   :  { %v258_v20 = vor.u32 1.1754944e-38, %v257_v14  ;;  %vm256_vm7 = vcmp.eq.f32.partialorder %v255_v16, 8.507059e+37  ;;  %v580_v16 = vld [vmem:[#allocation4 + $0x8] sm:$0xff] }
 0x140   :  { %446 = vmatpush.bf16.msrb.mxu0 %v580_v16 }
 0x143   :  { %v602_v11 = vpop.eup %601 }
 0x144   :  { %v247_v12 = vmul.f32 %v602_v11, %v245_v10  ;;  %vm252_vm3 = vweird.f32 %v602_v11  ;;  %447 = vmatpush.bf16.msrb.mxu0 %v579_v17 }
 0x145   :  { %vm253_vm6 = vmor %vm251_vm5, %vm252_vm3 }
 0x146   :  { %v248_v13 = vsub.f32 1.0, %v247_v12 }
 0x148   :  { %v249_v15 = vmul.f32 %v602_v11, %v248_v13 }
 0x14a   :  { %v250_v19 = vadd.f32 %v602_v11, %v249_v15 }
 0x14c   :  { %v254_v21 = vsel %vm253_vm6, %v602_v11, %v250_v19 }
 0x14d   :  { %v259_v23 = vsel %vm256_vm7, %v258_v20, %v254_v21 }
 0x14e   :  { %v269_v24 = vmul.f32 %v267_v22, %v259_v23  ;;  %v276_v31 = vsub.f32 1.0, %v259_v23 }
 0x150   :  { %271 = vrot.lane.b32.xlu1 %v269_v24, %s669_s17 }
 0x1c2   :  { %v272_v25 = vpop.permute.xlu1 %271 }
 0x1c3   :  { %v274_v26 = vadd.f32 %v272_v25, %v220_v3  ;;  %v598_v25 = vld [vmem:[%s824_s7] ss:$0 sm:$0xff] }
 0x1c5   :  { %603 = vtanh.f32 %v274_v26 }
 0x1cb   :  { %v604_v27 = vpop.eup %603 }
 0x1cc   :  { %278 = vrot.lane.b32.xlu2 %v604_v27, %s674_s2 }
 0x1d4   :  { %283 = vrot.lane.b32.xlu2 %v752_v51, %s675_s16 }
 0x1dc   :  { %372 = vrot.lane.b32.xlu2 %v768_v61, %s676_s18 }
 0x226   :  { %v279_v30 = vpop.permute.xlu2 %278 }
 0x227   :  { %v281_v33 = vmul.f32 %v279_v30, %v276_v31 }
 0x22e   :  { %v284_v32 = vpop.permute.xlu2 %283 }
 0x22f   :  { %v286_v34 = vmul.f32 %v284_v32, %v259_v23 }
 0x231   :  { %v783_v35 = vadd.f32 %v286_v34, %v281_v33 }
 0x233   :  { %v288_v36 = vpack.c.bf16 %v783_v35, %v783_v35 }
 0x235   :  { %298 = vrot.lane.b32.xlu0 %v288_v36, %s674_s2 }
 0x236   :  { %v373_v59 = vpop.permute.xlu2 %372 }
 0x23d   :  { %395 = vrot.lane.b32.xlu0 %v768_v61, %s677_s21 }
 0x2a7   :  { %v299_v37 = vpop.permute.xlu0 %298 }
 0x2a8   :  { %546 = vmatmul.msk.bf16.vlgmr.msrb.gmra.mxu2 %vm312_vm8, %v299_v37 }
 0x2af   :  { %v396_v10 = vpop.permute.xlu0 %395 }
 0x32b   :  { %v325_v39 = vpop.f32.mrf.mxu2 }
 0x32c   :  { %v326_v40 = vadd.f32 %v597_v38, %v325_v39 }
 0x32e   :  { %v329_v41 = vmul.f32 %v326_v40, %v326_v40 }
 0x330   :  { %v331_v42 = vsel %vm330_vm9, %v329_v41, 0.0 }
 0x331   :  { %332 = vadd.xlane.f32.xlu1 %v331_v42 }
 0x333   :  { %v327_v43 = vpop.f32.mrf.mxu2 }
 0x3a4   :  { %v333_v45 = vpop.xlane.xlu1 %332 }
 0x3a5   :  { %v334_v46 = vmax.f32 %v333_v45, 1e-24 }
 0x3a7   :  { %605 = vrsqrt.f32 %v334_v46  ;;  %vm341_vm11 = vweird.f32 %v334_v46 }
 0x3ad   :  { %v606_v47 = vpop.eup %605 }
 0x3ae   :  { %v336_v48 = vmul.f32 %v606_v47, %v334_v46  ;;  %vm342_vm10 = vweird.f32 %v606_v47 }
 0x3af   :  { %vm343_vm12 = vmor %vm341_vm11, %vm342_vm10 }
 0x3b0   :  { %v337_v49 = vmul.f32 %v606_v47, %v336_v48 }
 0x3b2   :  { %v338_v50 = vmul.f32 0.5, %v337_v49 }
 0x3b4   :  { %v339_v52 = vsub.f32 1.5, %v338_v50 }
 0x3b6   :  { %v340_v53 = vmul.f32 %v606_v47, %v339_v52 }
 0x3b8   :  { %v344_v54 = vsel %vm343_vm12, %v606_v47, %v340_v53 }
 0x3b9   :  { %v797_v55 = vmul.f32 %v344_v54, %v326_v40 }
 0x3bb   :  { %v346_v56 = vpack.c.bf16 %v797_v55, %v797_v55 }
 0x3bd   :  { %551 = vmatmul.msk.bf16.vlgmr.msrb.gmra.mxu3 %vm330_vm9, %v346_v56 }
 0x440   :  { %v367_v57 = vpop.f32.mrf.mxu3 }
 0x441   :  { %v371_v58 = vadd.f32 %v367_v57, %v771_v4 }
 0x443   :  { %v375_v60 = vadd.f32 %v373_v59, %v371_v58 }
 0x445   :  { %v552_v61 = vmul.f32 -1.442695, %v375_v60 }
 0x447   :  { %607 = vpow2.f32 %v552_v61 }
 0x448   :  { %v369_v62 = vpop.f32.mrf.mxu3 }
 0x44d   :  { %v608_v63 = vpop.eup %607 }
 0x44e   :  { %v379_v0 = vadd.f32 1.0, %v608_v63 }
 0x450   :  { %609 = vrcp.f32 %v379_v0  ;;  %v391_v5 = vand.u32 2147483648, %v379_v0  ;;  %v389_v7 = vand.u32 2147483647, %v379_v0  ;;  %vm385_vm14 = vweird.f32 %v379_v0 }
 0x452   :  { %v392_v9 = vor.u32 1.1754944e-38, %v391_v5  ;;  %vm390_vm0 = vcmp.eq.f32.partialorder %v389_v7, 8.507059e+37 }
 0x456   :  { %v610_v1 = vpop.eup %609 }
 0x457   :  { %v381_v2 = vmul.f32 %v610_v1, %v379_v0  ;;  %vm386_vm13 = vweird.f32 %v610_v1 }
 0x458   :  { %vm387_vm15 = vmor %vm385_vm14, %vm386_vm13 }
 0x459   :  { %v382_v3 = vsub.f32 1.0, %v381_v2 }
 0x45b   :  { %v383_v6 = vmul.f32 %v610_v1, %v382_v3 }
 0x45d   :  { %v384_v8 = vadd.f32 %v610_v1, %v383_v6 }
 0x45f   :  { %v388_v4 = vsel %vm387_vm15, %v610_v1, %v384_v8 }
 0x460   :  { %v393_v11 = vsel %vm390_vm0, %v392_v9, %v388_v4 }
 0x461   :  { %v398_v12 = vmul.f32 %v396_v10, %v393_v11  ;;  %v405_v18 = vsub.f32 1.0, %v393_v11  ;;  %v411_v20 = vmul.f32 %v393_v11, %v752_v51 }
 0x463   :  { %400 = vrot.lane.b32.xlu2 %v398_v12, %s669_s17 }
 0x4bd   :  { %v401_v13 = vpop.permute.xlu2 %400 }
 0x4be   :  { %v403_v14 = vadd.f32 %v401_v13, %v371_v58 }
 0x4c0   :  { %611 = vtanh.f32 %v403_v14 }
 0x4c6   :  { %v612_v15 = vpop.eup %611 }
 0x4c7   :  { %407 = vrot.lane.b32.xlu0 %v612_v15, %s674_s2 }
 0x4cf   :  { %454 = vrot.lane.b32.xlu0 %v783_v35, %s678_s3 }
 0x539   :  { %v408_v19 = vpop.permute.xlu0 %407 }
 0x53a   :  { %v410_v21 = vmul.f32 %v408_v19, %v405_v18 }
 0x53c   :  { %v412_v22 = vadd.f32 %v411_v20, %v410_v21 }
 0x53e   :  { %v413_v23 = vpack.c.bf16 %v412_v22, %v412_v22 }
 0x540   :  { %423 = vrot.lane.b32.xlu2 %v413_v23, %s674_s2 }
 0x541   :  { %v455_v51 = vpop.permute.xlu0 %454 }
 0x542   :  { %v465_v30 = vsel %vm330_vm9, %v797_v55, %v455_v51 }
 0x548   :  { %458 = vrot.lane.b32.xlu2 %v412_v22, %s679_s5 }
 0x59a   :  { %v424_v24 = vpop.permute.xlu2 %423 }
 0x59b   :  { %561 = vmatmul.msk.bf16.vlgmr.msrb.gmra.mxu0 %vm312_vm8, %v424_v24 }
 0x5a2   :  { %v459_v29 = vpop.permute.xlu2 %458 }
 0x5a3   :  { %v467_v31 = vsel %vm466_vm1, %v465_v30, %v459_v29 }
 0x618   :  { %v449_v26 = vpop.f32.mrf.mxu0 }
 0x619   :  { %v450_v27 = vadd.f32 %v598_v25, %v449_v26 }
 0x61b   :  { %462 = vrot.lane.b32.xlu0 %v450_v27, %s680_s26 }
 0x620   :  { %v451_v28 = vpop.f32.mrf.mxu0 }
 0x68d   :  { %v463_v32 = vpop.permute.xlu0 %462 }
 0x68e   :  { %v469_v33 = vsel %vm468_vm2, %v467_v31, %v463_v32 }
 0x68f   :  { %470 = vst [vmem:[%s825_s8] sm:$0xff] %v469_v33 }
 0x690   :  { %475 = vsyncpa [#allocation3], 1 }
 0x691   :  { %476 = vsyncpa [#allocation5], 1 }

</bundles_post_ra>
